<compile_context>
chip_gen: v7x
topology: tpu7x:2x2x1
jax: 0.10.0
libtpu: 0.0.40
codegen_flags: <defaults>
</compile_context>

<pallas_src>
import numpy as np
import jax
import jax.numpy as jnp
from jax.experimental import pallas as pl
from jax.experimental.pallas import tpu as pltpu


# ---------------------------------------------------------------------------
# complex matmul helpers (Gauss 3-multiply, bf16 MXU operands, f32 accumulate)
# ---------------------------------------------------------------------------
def _dot(a, b):
    return jnp.dot(a, b, preferred_element_type=jnp.float32)


def _cmm_left(mr, mi, ms, xr, xi):
    """(mr + i*mi) @ (xr + i*xi); m planes are bf16, ms = mr + mi precomputed."""
    xrb = xr.astype(jnp.bfloat16)
    xib = xi.astype(jnp.bfloat16)
    xsb = (xr + xi).astype(jnp.bfloat16)
    t1 = _dot(mr, xrb)
    t2 = _dot(mi, xib)
    t3 = _dot(ms, xsb)
    return t1 - t2, t3 - t1 - t2


def _cmm_right(xr, xi, mr, mi, ms):
    """(xr + i*xi) @ (mr + i*mi); m planes are bf16, ms = mr + mi precomputed."""
    xrb = xr.astype(jnp.bfloat16)
    xib = xi.astype(jnp.bfloat16)
    xsb = (xr + xi).astype(jnp.bfloat16)
    t1 = _dot(xrb, mr)
    t2 = _dot(xib, mi)
    t3 = _dot(xsb, ms)
    return t1 - t2, t3 - t1 - t2


def _coil_loop(C, body, init):
    """Small static coil counts: static Python indexing.  Larger: fori_loop so
    live ranges stay bounded (per perf guidance)."""
    if C <= 4:
        carry = init
        for c in range(C):
            carry = body(c, carry)
        return carry
    return jax.lax.fori_loop(0, C, body, init)


# ---------------------------------------------------------------------------
# Pallas kernels
# ---------------------------------------------------------------------------
def _sens_reduce_kernel(ku_re, ku_im, s_re, s_im, gh, gw, out_re, out_im):
    """img = sum_c ifft2c(kspace_c) * conj(sens_c) for one (b, t) slice."""
    H, W = out_re.shape
    C = ku_re.shape[0]
    ghr, ghi, ghs = gh[0], gh[1], gh[2]
    gwr, gwi, gws = gw[0], gw[1], gw[2]

    def body(c, carry):
        ar, ai = carry
        xr, xi = _cmm_left(ghr, ghi, ghs, ku_re[c], ku_im[c])
        xr, xi = _cmm_right(xr, xi, gwr, gwi, gws)
        sr = s_re[c]
        si = s_im[c]
        return ar + xr * sr + xi * si, ai + xi * sr - xr * si

    zero = jnp.zeros((H, W), jnp.float32)
    acc_r, acc_i = _coil_loop(C, body, (zero, zero))
    out_re[...] = acc_r
    out_im[...] = acc_i


def _irb_kernel(sc, w1a, w1b, b1, w2r, w2i, b2,        # SMEM scalars / weights
                img_re, img_im,                        # (H, W)  current image
                s_re, s_im,                            # (C, H, W) sens maps
                const_re, const_im,                    # (H, W)  sens_reduce(M*ku)
                msq,                                   # (H, W)  mask*mask
                fh, fw, gh, gw,                        # (3,H,H)/(3,W,W) bf16 DFT
                out_re, out_im):
    """One fused IRB update for one (b, t) slice:
       img <- img - step*(2*(sens_reduce(M^2*sens_expand(img)) - const) + scale*reg(img))
    """
    H, W = out_re.shape
    C = s_re.shape[0]
    E = w1a.shape[0]

    ir = img_re[...]
    ii = img_im[...]
    m2 = msq[...]
    zero = jnp.zeros((H, W), jnp.float32)

    # ---- regularizer (SwinUNet3D surrogate): per-voxel 2 -> E -> 2 gelu MLP ----
    def mlp_body(e, carry):
        ar, ai = carry
        h = jax.nn.gelu(ir * w1a[e] + ii * w1b[e] + b1[e])
        return ar + h * w2r[e], ai + h * w2i[e]

    reg_r, reg_i = jax.lax.fori_loop(0, E, mlp_body, (zero, zero))
    reg_r = reg_r + b2[0]
    reg_i = reg_i + b2[1]

    # ---- data consistency: sens_expand -> fft2c -> M^2 -> ifft2c -> sens_reduce ----
    fhr, fhi, fhs = fh[0], fh[1], fh[2]
    fwr, fwi, fws = fw[0], fw[1], fw[2]
    ghr, ghi, ghs = gh[0], gh[1], gh[2]
    gwr, gwi, gws = gw[0], gw[1], gw[2]

    def coil_body(c, carry):
        ar, ai = carry
        sr = s_re[c]
        si = s_im[c]
        er = ir * sr - ii * si                       # img * sens_c
        ei = ir * si + ii * sr
        kr, ki = _cmm_left(fhr, fhi, fhs, er, ei)    # fft2c (centered DFT matmuls)
        kr, ki = _cmm_right(kr, ki, fwr, fwi, fws)
        kr = m2 * kr                                  # mask^2 * kspace
        ki = m2 * ki
        xr, xi = _cmm_left(ghr, ghi, ghs, kr, ki)    # ifft2c
        xr, xi = _cmm_right(xr, xi, gwr, gwi, gws)
        return ar + xr * sr + xi * si, ai + xi * sr - xr * si   # * conj(sens_c)

    acc_r, acc_i = _coil_loop(C, coil_body, (zero, zero))

    dc_r = acc_r - const_re[...]
    dc_i = acc_i - const_im[...]
    step = sc[0]
    scale = sc[1]
    out_re[...] = ir - step * (2.0 * dc_r + scale * reg_r)
    out_im[...] = ii - step * (2.0 * dc_i + scale * reg_i)


# ---------------------------------------------------------------------------
# Pallas wrappers
# ---------------------------------------------------------------------------
_VMEM_LIMIT = 64 * 1024 * 1024


def _sens_reduce(ku_re, ku_im, s_re, s_im, gh, gw):
    BT, C, H, W = ku_re.shape
    spec_chw = pl.BlockSpec((None, C, H, W), lambda i: (i, 0, 0, 0))
    spec_hw = pl.BlockSpec((None, H, W), lambda i: (i, 0, 0))
    spec_gh = pl.BlockSpec((3, H, H), lambda i: (0, 0, 0))
    spec_gw = pl.BlockSpec((3, W, W), lambda i: (0, 0, 0))
    return pl.pallas_call(
        _sens_reduce_kernel,
        out_shape=(jax.ShapeDtypeStruct((BT, H, W), jnp.float32),
                   jax.ShapeDtypeStruct((BT, H, W), jnp.float32)),
        grid=(BT,),
        in_specs=[spec_chw, spec_chw, spec_chw, spec_chw, spec_gh, spec_gw],
        out_specs=(spec_hw, spec_hw),
        compiler_params=pltpu.CompilerParams(
            dimension_semantics=("parallel",),
            vmem_limit_bytes=_VMEM_LIMIT),
    )(ku_re, ku_im, s_re, s_im, gh, gw)


def _irb_step(sc, w1a, w1b, b1, w2r, w2i, b2,
              img_re, img_im, s_re, s_im, const_re, const_im,
              msq, fh, fw, gh, gw):
    BT, C, H, W = s_re.shape
    smem = pl.BlockSpec(memory_space=pltpu.MemorySpace.SMEM)
    spec_chw = pl.BlockSpec((None, C, H, W), lambda i: (i, 0, 0, 0))
    spec_hw = pl.BlockSpec((None, H, W), lambda i: (i, 0, 0))
    spec_m = pl.BlockSpec((H, W), lambda i: (0, 0))
    spec_fh = pl.BlockSpec((3, H, H), lambda i: (0, 0, 0))
    spec_fw = pl.BlockSpec((3, W, W), lambda i: (0, 0, 0))
    return pl.pallas_call(
        _irb_kernel,
        out_shape=(jax.ShapeDtypeStruct((BT, H, W), jnp.float32),
                   jax.ShapeDtypeStruct((BT, H, W), jnp.float32)),
        grid=(BT,),
        in_specs=[smem, smem, smem, smem, smem, smem, smem,
                  spec_hw, spec_hw,                    # img re/im
                  spec_chw, spec_chw,                  # sens re/im
                  spec_hw, spec_hw,                    # const re/im
                  spec_m,                              # mask^2
                  spec_fh, spec_fw, spec_fh, spec_fw], # DFT matrices (bf16)
        out_specs=(spec_hw, spec_hw),
        compiler_params=pltpu.CompilerParams(
            dimension_semantics=("parallel",),
            vmem_limit_bytes=_VMEM_LIMIT),
    )(sc, w1a, w1b, b1, w2r, w2i, b2,
      img_re, img_im, s_re, s_im, const_re, const_im,
      msq, fh, fw, gh, gw)


# ---------------------------------------------------------------------------
# glue (plain JAX): padding, centered DFT matrices, full forward
# ---------------------------------------------------------------------------
def _pad_to_max_size(x, max_size):
    orig = (x.shape[-3], x.shape[-2])
    pad = [(0, 0)] * (x.ndim - 3) + [(0, max_size[0] - orig[0]),
                                     (0, max_size[1] - orig[1]), (0, 0)]
    return jnp.pad(x, pad), orig


def _unpad_from_max_size(x, orig):
    return x[..., :orig[0], :orig[1], :]


def _centered_dft_planes(n, inverse):
    """bf16 (3, n, n): [re, im, re+im] of F s.t. F@v == fftshift(fft(ifftshift(v),
    norm='ortho')).  Symmetric for even n, so it is used on both sides."""
    eye = jnp.eye(n, dtype=jnp.complex64)
    x = jnp.fft.ifftshift(eye, axes=0)
    f = (jnp.fft.ifft(x, axis=0, norm="ortho") if inverse
         else jnp.fft.fft(x, axis=0, norm="ortho"))
    f = jnp.fft.fftshift(f, axes=0)
    fr = jnp.real(f).astype(jnp.float32)
    fi = jnp.imag(f).astype(jnp.float32)
    return jnp.stack([fr, fi, fr + fi], axis=0).astype(jnp.bfloat16)


def recon_model_forward(params, target_kspace_u, mask, num_low_frequencies,
                        attrs, max_img_size):
    """ReconModel.forward, coils == 1 branch (SMEB3D / SMRB are skipped)."""
    del num_low_frequencies, attrs
    # sens maps = ones_like(kspace) (real AND imag = 1, exactly like torch.ones_like)
    kspace_p, orig_hw = _pad_to_max_size(target_kspace_u, max_img_size)
    mask_p, _ = _pad_to_max_size(mask, max_img_size)
    sens_p = jnp.ones_like(kspace_p)

    B, C, T, H, W, _ = kspace_p.shape
    mask_hw = jnp.broadcast_to(mask_p, (B, C, T, H, W, 1))[0, 0, 0, :, :, 0]
    mask_hw = mask_hw.astype(jnp.float32)

    def to_planes(x):  # (B, C, T, H, W, 2) -> two (B*T, C, H, W) planes
        xt = jnp.transpose(x, (0, 2, 1, 3, 4, 5)).reshape(B * T, C, H, W, 2)
        return xt[..., 0], xt[..., 1]

    ku_re, ku_im = to_planes(kspace_p)
    s_re, s_im = to_planes(sens_p)

    fh = _centered_dft_planes(H, False)
    fw = _centered_dft_planes(W, False)
    gh = _centered_dft_planes(H, True)
    gw = _centered_dft_planes(W, True)

    # initial coil-combined image: sens_reduce(kspace_u, sens)
    img_re, img_im = _sens_reduce(ku_re, ku_im, s_re, s_im, gh, gw)

    # constant data-consistency term: sens_reduce(mask * kspace_u, sens)
    const_re, const_im = _sens_reduce(ku_re * mask_hw, ku_im * mask_hw,
                                      s_re, s_im, gh, gw)
    msq = mask_hw * mask_hw

    step = jnp.asarray(params["stepsize"], jnp.float32).reshape(-1)[0]
    sc = jnp.stack([step, jnp.asarray(params["scale"], jnp.float32)])

    # unrolled recurrent IRB blocks (regularizer fused into the DC kernel)
    for idx in range(len(params["reg_w1"])):
        w1 = jnp.asarray(params["reg_w1"][idx], jnp.float32)    # (2, E)
        b1 = jnp.asarray(params["reg_b1"][idx], jnp.float32)    # (1, E)
        w2 = jnp.asarray(params["reg_w2"][idx], jnp.float32)    # (E, 2)
        b2 = jnp.asarray(params["reg_b2"][idx], jnp.float32)    # (1, 2)
        img_re, img_im = _irb_step(sc, w1[0], w1[1], b1[0], w2[:, 0], w2[:, 1],
                                   b2[0], img_re, img_im, s_re, s_im,
                                   const_re, const_im, msq, fh, fw, gh, gw)

    img = jnp.stack([img_re, img_im], axis=-1).reshape(B, T, H, W, 2)[:, None]
    img = _unpad_from_max_size(img, orig_hw)
    sens_out = _unpad_from_max_size(sens_p, orig_hw)
    return img, sens_out


# ---------------------------------------------------------------------------
# pure-JAX / FFT reference of the same forward (for numerical verification)
# ---------------------------------------------------------------------------
def reference_forward(params, target_kspace_u, mask):
    ks = target_kspace_u[..., 0] + 1j * target_kspace_u[..., 1]      # (B,C,T,H,W)
    sens = jnp.full(ks.shape, 1.0 + 1.0j, jnp.complex64)
    mw = mask[0, 0, 0, :, :, 0]

    def fft2c(x):
        return jnp.fft.fftshift(jnp.fft.fft2(
            jnp.fft.ifftshift(x, axes=(-2, -1)), axes=(-2, -1), norm="ortho"),
            axes=(-2, -1))

    def ifft2c(x):
        return jnp.fft.fftshift(jnp.fft.ifft2(
            jnp.fft.ifftshift(x, axes=(-2, -1)), axes=(-2, -1), norm="ortho"),
            axes=(-2, -1))

    img = jnp.sum(ifft2c(ks) * jnp.conj(sens), axis=1)                # (B,T,H,W)
    step = params["stepsize"][0]
    scale = params["scale"]
    for i in range(len(params["reg_w1"])):
        x = jnp.stack([img.real, img.imag], -1)
        h = jax.nn.gelu(jnp.einsum("...c,ce->...e", x, params["reg_w1"][i])
                        + params["reg_b1"][i][0])
        y = jnp.einsum("...e,ec->...c", h, params["reg_w2"][i]) + params["reg_b2"][i][0]
        reg = y[..., 0] + 1j * y[..., 1]
        kexp = fft2c(img[:, None] * sens)
        resid = mw * (mw * kexp - ks)
        red = jnp.sum(ifft2c(resid) * jnp.conj(sens), axis=1)
        img = img - step * (2.0 * red + scale * reg)
    return img


# ---------------------------------------------------------------------------
if __name__ == "__main__":
    B, C, T, H, W = 2, 1, 4, 32, 128         # coils == 1 branch; W lane-aligned
    E = 32                                    # embed_dim of the regularizer
    NUM_RECURRENT = 3
    SCALE = 0.1
    num_low_frequencies = 8
    max_img_size = (H, W)

    key = jax.random.PRNGKey(0)
    keys = jax.random.split(key, 2 + 4 * NUM_RECURRENT)
    k_data, k_step, wkeys = keys[0], keys[1], keys[2:]

    params = {
        "stepsize": 0.1 * jax.random.uniform(k_step, (1,), jnp.float32),
        "scale": SCALE,
        "reg_w1": [0.1 * jax.random.normal(wkeys[4 * i + 0], (2, E), jnp.float32)
                   for i in range(NUM_RECURRENT)],
        "reg_b1": [0.01 * jax.random.normal(wkeys[4 * i + 1], (1, E), jnp.float32)
                   for i in range(NUM_RECURRENT)],
        "reg_w2": [0.1 * jax.random.normal(wkeys[4 * i + 2], (E, 2), jnp.float32)
                   for i in range(NUM_RECURRENT)],
        "reg_b2": [0.01 * jax.random.normal(wkeys[4 * i + 3], (1, 2), jnp.float32)
                   for i in range(NUM_RECURRENT)],
    }

    # deterministic Cartesian undersampling mask (every other column + center lines)
    mask_w = np.zeros((W,), np.float32)
    mask_w[::2] = 1.0
    c0 = W // 2 - num_low_frequencies // 2
    mask_w[c0:c0 + num_low_frequencies] = 1.0
    mask = jnp.asarray(np.broadcast_to(mask_w[None, :], (H, W)).copy()
                       ).reshape(1, 1, 1, H, W, 1)

    kspace_full = jax.random.normal(k_data, (B, C, T, H, W, 2), jnp.float32)
    target_kspace_u = kspace_full * mask
    attrs = {}

    img_out, sens_out = recon_model_forward(params, target_kspace_u, mask,
                                            num_low_frequencies, attrs, max_img_size)
    jax.block_until_ready((img_out, sens_out))

    assert img_out.shape == (B, 1, T, H, W, 2)
    assert sens_out.shape == (B, C, T, H, W, 2)

    # numerical check against a pure-JAX f32 FFT reference of the same forward.
    # tolerance accounts for bf16 MXU operands (f32 accumulation) in the kernels.
    ref_img = reference_forward(params, target_kspace_u, mask)
    got = np.asarray(img_out[:, 0, ..., 0] + 1j * img_out[:, 0, ..., 1])
    ref = np.asarray(ref_img)
    rel = np.linalg.norm(got - ref) / (np.linalg.norm(ref) + 1e-12)
    assert rel < 5e-2, f"relative error too large: {rel}"

    print("KERNEL_OK")
</pallas_src>

<mosaic_0001>
module attributes {stable_mosaic.version = 11 : i64} {
  func.func @_sens_reduce_kernel(%arg0: i32, %arg1: memref<1x1x32x128xf32, #tpu.memory_space<vmem>>, %arg2: memref<1x1x32x128xf32, #tpu.memory_space<vmem>>, %arg3: memref<1x1x32x128xf32, #tpu.memory_space<vmem>>, %arg4: memref<1x1x32x128xf32, #tpu.memory_space<vmem>>, %arg5: memref<3x32x32xbf16, #tpu.memory_space<vmem>>, %arg6: memref<3x128x128xbf16, #tpu.memory_space<vmem>>, %arg7: memref<1x32x128xf32, #tpu.memory_space<vmem>>, %arg8: memref<1x32x128xf32, #tpu.memory_space<vmem>>) attributes {dimension_semantics = [#tpu.dimension_semantics<parallel>], iteration_bounds = array<i64: 8>, scalar_prefetch = 0 : i64, scratch_operands = 0 : i64, tpu.core_type = #tpu.core_type<tc>, window_params = [{transform_indices = @transform_0, window_bounds = array<i64: 1, 1, 32, 128>}, {transform_indices = @transform_1, window_bounds = array<i64: 1, 1, 32, 128>}, {transform_indices = @transform_2, window_bounds = array<i64: 1, 1, 32, 128>}, {transform_indices = @transform_3, window_bounds = array<i64: 1, 1, 32, 128>}, {pipeline_mode = #tpu.pipeline_mode<synchronous>, transform_indices = @transform_4, window_bounds = array<i64: 3, 32, 32>}, {pipeline_mode = #tpu.pipeline_mode<synchronous>, transform_indices = @transform_5, window_bounds = array<i64: 3, 128, 128>}, {transform_indices = @transform_6, window_bounds = array<i64: 1, 32, 128>}, {transform_indices = @transform_7, window_bounds = array<i64: 1, 32, 128>}]} {
    %c0 = arith.constant 0 : index
    %c0_0 = arith.constant 0 : index
    %c0_1 = arith.constant 0 : index
    %0 = vector.load %arg5[%c0, %c0_0, %c0_1] : memref<3x32x32xbf16, #tpu.memory_space<vmem>>, vector<1x32x32xbf16>
    %1 = vector.shape_cast %0 : vector<1x32x32xbf16> to vector<32x32xbf16>
    %c1 = arith.constant 1 : index
    %c0_2 = arith.constant 0 : index
    %c0_3 = arith.constant 0 : index
    %2 = vector.load %arg5[%c1, %c0_2, %c0_3] : memref<3x32x32xbf16, #tpu.memory_space<vmem>>, vector<1x32x32xbf16>
    %3 = vector.shape_cast %2 : vector<1x32x32xbf16> to vector<32x32xbf16>
    %c2 = arith.constant 2 : index
    %c0_4 = arith.constant 0 : index
    %c0_5 = arith.constant 0 : index
    %4 = vector.load %arg5[%c2, %c0_4, %c0_5] : memref<3x32x32xbf16, #tpu.memory_space<vmem>>, vector<1x32x32xbf16>
    %5 = vector.shape_cast %4 : vector<1x32x32xbf16> to vector<32x32xbf16>
    %c0_6 = arith.constant 0 : index
    %c0_7 = arith.constant 0 : index
    %c0_8 = arith.constant 0 : index
    %6 = vector.load %arg6[%c0_6, %c0_7, %c0_8] : memref<3x128x128xbf16, #tpu.memory_space<vmem>>, vector<1x128x128xbf16>
    %7 = vector.shape_cast %6 : vector<1x128x128xbf16> to vector<128x128xbf16>
    %c1_9 = arith.constant 1 : index
    %c0_10 = arith.constant 0 : index
    %c0_11 = arith.constant 0 : index
    %8 = vector.load %arg6[%c1_9, %c0_10, %c0_11] : memref<3x128x128xbf16, #tpu.memory_space<vmem>>, vector<1x128x128xbf16>
    %9 = vector.shape_cast %8 : vector<1x128x128xbf16> to vector<128x128xbf16>
    %c2_12 = arith.constant 2 : index
    %c0_13 = arith.constant 0 : index
    %c0_14 = arith.constant 0 : index
    %10 = vector.load %arg6[%c2_12, %c0_13, %c0_14] : memref<3x128x128xbf16, #tpu.memory_space<vmem>>, vector<1x128x128xbf16>
    %11 = vector.shape_cast %10 : vector<1x128x128xbf16> to vector<128x128xbf16>
    %cst = arith.constant 0.000000e+00 : f32
    %12 = vector.broadcast %cst : f32 to vector<32x128xf32>
    %c0_15 = arith.constant 0 : index
    %c0_16 = arith.constant 0 : index
    %c0_17 = arith.constant 0 : index
    %c0_18 = arith.constant 0 : index
    %13 = vector.load %arg1[%c0_15, %c0_16, %c0_17, %c0_18] : memref<1x1x32x128xf32, #tpu.memory_space<vmem>>, vector<1x1x32x128xf32>
    %14 = vector.shape_cast %13 : vector<1x1x32x128xf32> to vector<32x128xf32>
    %c0_19 = arith.constant 0 : index
    %c0_20 = arith.constant 0 : index
    %c0_21 = arith.constant 0 : index
    %c0_22 = arith.constant 0 : index
    %15 = vector.load %arg2[%c0_19, %c0_20, %c0_21, %c0_22] : memref<1x1x32x128xf32, #tpu.memory_space<vmem>>, vector<1x1x32x128xf32>
    %16 = vector.shape_cast %15 : vector<1x1x32x128xf32> to vector<32x128xf32>
    %17 = arith.truncf %14 : vector<32x128xf32> to vector<32x128xbf16>
    %18 = arith.truncf %16 : vector<32x128xf32> to vector<32x128xbf16>
    %19 = arith.addf %14, %16 : vector<32x128xf32>
    %20 = arith.truncf %19 : vector<32x128xf32> to vector<32x128xbf16>
    %cst_23 = arith.constant dense<0.000000e+00> : vector<32x128xf32>
    %21 = tpu.matmul %1, %17, %cst_23 {dimension_numbers = #tpu.dot_dimension_numbers<[1], [0], [0], [1], [0, 0, 1, 1], [], []>} : vector<32x32xbf16>, vector<32x128xbf16>, vector<32x128xf32> -> vector<32x128xf32>
    %cst_24 = arith.constant dense<0.000000e+00> : vector<32x128xf32>
    %22 = tpu.matmul %3, %18, %cst_24 {dimension_numbers = #tpu.dot_dimension_numbers<[1], [0], [0], [1], [0, 0, 1, 1], [], []>} : vector<32x32xbf16>, vector<32x128xbf16>, vector<32x128xf32> -> vector<32x128xf32>
    %cst_25 = arith.constant dense<0.000000e+00> : vector<32x128xf32>
    %23 = tpu.matmul %5, %20, %cst_25 {dimension_numbers = #tpu.dot_dimension_numbers<[1], [0], [0], [1], [0, 0, 1, 1], [], []>} : vector<32x32xbf16>, vector<32x128xbf16>, vector<32x128xf32> -> vector<32x128xf32>
    %24 = arith.subf %21, %22 : vector<32x128xf32>
    %25 = arith.subf %23, %21 : vector<32x128xf32>
    %26 = arith.subf %25, %22 : vector<32x128xf32>
    %27 = arith.truncf %24 : vector<32x128xf32> to vector<32x128xbf16>
    %28 = arith.truncf %26 : vector<32x128xf32> to vector<32x128xbf16>
    %29 = arith.addf %24, %26 : vector<32x128xf32>
    %30 = arith.truncf %29 : vector<32x128xf32> to vector<32x128xbf16>
    %cst_26 = arith.constant dense<0.000000e+00> : vector<32x128xf32>
    %31 = tpu.matmul %27, %7, %cst_26 {dimension_numbers = #tpu.dot_dimension_numbers<[1], [0], [0], [1], [0, 0, 1, 1], [], []>} : vector<32x128xbf16>, vector<128x128xbf16>, vector<32x128xf32> -> vector<32x128xf32>
    %cst_27 = arith.constant dense<0.000000e+00> : vector<32x128xf32>
    %32 = tpu.matmul %28, %9, %cst_27 {dimension_numbers = #tpu.dot_dimension_numbers<[1], [0], [0], [1], [0, 0, 1, 1], [], []>} : vector<32x128xbf16>, vector<128x128xbf16>, vector<32x128xf32> -> vector<32x128xf32>
    %cst_28 = arith.constant dense<0.000000e+00> : vector<32x128xf32>
    %33 = tpu.matmul %30, %11, %cst_28 {dimension_numbers = #tpu.dot_dimension_numbers<[1], [0], [0], [1], [0, 0, 1, 1], [], []>} : vector<32x128xbf16>, vector<128x128xbf16>, vector<32x128xf32> -> vector<32x128xf32>
    %34 = arith.subf %31, %32 : vector<32x128xf32>
    %35 = arith.subf %33, %31 : vector<32x128xf32>
    %36 = arith.subf %35, %32 : vector<32x128xf32>
    %c0_29 = arith.constant 0 : index
    %c0_30 = arith.constant 0 : index
    %c0_31 = arith.constant 0 : index
    %c0_32 = arith.constant 0 : index
    %37 = vector.load %arg3[%c0_29, %c0_30, %c0_31, %c0_32] : memref<1x1x32x128xf32, #tpu.memory_space<vmem>>, vector<1x1x32x128xf32>
    %38 = vector.shape_cast %37 : vector<1x1x32x128xf32> to vector<32x128xf32>
    %c0_33 = arith.constant 0 : index
    %c0_34 = arith.constant 0 : index
    %c0_35 = arith.constant 0 : index
    %c0_36 = arith.constant 0 : index
    %39 = vector.load %arg4[%c0_33, %c0_34, %c0_35, %c0_36] : memref<1x1x32x128xf32, #tpu.memory_space<vmem>>, vector<1x1x32x128xf32>
    %40 = vector.shape_cast %39 : vector<1x1x32x128xf32> to vector<32x128xf32>
    %41 = arith.mulf %34, %38 : vector<32x128xf32>
    %42 = arith.addf %12, %41 : vector<32x128xf32>
    %43 = arith.mulf %36, %40 : vector<32x128xf32>
    %44 = arith.addf %42, %43 : vector<32x128xf32>
    %45 = arith.mulf %36, %38 : vector<32x128xf32>
    %46 = arith.addf %12, %45 : vector<32x128xf32>
    %47 = arith.mulf %34, %40 : vector<32x128xf32>
    %48 = arith.subf %46, %47 : vector<32x128xf32>
    %c0_37 = arith.constant 0 : index
    %c0_38 = arith.constant 0 : index
    %c0_39 = arith.constant 0 : index
    %49 = vector.load %arg7[%c0_37, %c0_38, %c0_39] : memref<1x32x128xf32, #tpu.memory_space<vmem>>, vector<1x32x128xf32>
    %50 = vector.shape_cast %49 : vector<1x32x128xf32> to vector<32x128xf32>
    %51 = vector.shape_cast %44 : vector<32x128xf32> to vector<1x32x128xf32>
    tpu.vector_store %arg7[%c0_37, %c0_38, %c0_39], %51 {strides = array<i32>} : memref<1x32x128xf32, #tpu.memory_space<vmem>>, vector<1x32x128xf32>,
    %c0_40 = arith.constant 0 : index
    %c0_41 = arith.constant 0 : index
    %c0_42 = arith.constant 0 : index
    %52 = vector.load %arg8[%c0_40, %c0_41, %c0_42] : memref<1x32x128xf32, #tpu.memory_space<vmem>>, vector<1x32x128xf32>
    %53 = vector.shape_cast %52 : vector<1x32x128xf32> to vector<32x128xf32>
    %54 = vector.shape_cast %48 : vector<32x128xf32> to vector<1x32x128xf32>
    tpu.vector_store %arg8[%c0_40, %c0_41, %c0_42], %54 {strides = array<i32>} : memref<1x32x128xf32, #tpu.memory_space<vmem>>, vector<1x32x128xf32>,
    return
  }
  func.func @transform_0(%arg0: i32) -> (i32, i32, i32, i32) {
    %c0_i32 = arith.constant 0 : i32
    %c0_i32_0 = arith.constant 0 : i32
    %c0_i32_1 = arith.constant 0 : i32
    %c0_i32_2 = arith.constant 0 : i32
    return %arg0, %c0_i32, %c0_i32_0, %c0_i32_1 : i32, i32, i32, i32
  }
  func.func @transform_1(%arg0: i32) -> (i32, i32, i32, i32) {
    %c0_i32 = arith.constant 0 : i32
    %c0_i32_0 = arith.constant 0 : i32
    %c0_i32_1 = arith.constant 0 : i32
    %c0_i32_2 = arith.constant 0 : i32
    return %arg0, %c0_i32, %c0_i32_0, %c0_i32_1 : i32, i32, i32, i32
  }
  func.func @transform_2(%arg0: i32) -> (i32, i32, i32, i32) {
    %c0_i32 = arith.constant 0 : i32
    %c0_i32_0 = arith.constant 0 : i32
    %c0_i32_1 = arith.constant 0 : i32
    %c0_i32_2 = arith.constant 0 : i32
    return %arg0, %c0_i32, %c0_i32_0, %c0_i32_1 : i32, i32, i32, i32
  }
  func.func @transform_3(%arg0: i32) -> (i32, i32, i32, i32) {
    %c0_i32 = arith.constant 0 : i32
    %c0_i32_0 = arith.constant 0 : i32
    %c0_i32_1 = arith.constant 0 : i32
    %c0_i32_2 = arith.constant 0 : i32
    return %arg0, %c0_i32, %c0_i32_0, %c0_i32_1 : i32, i32, i32, i32
  }
  func.func @transform_4(%arg0: i32) -> (i32, i32, i32) {
    %c0_i32 = arith.constant 0 : i32
    %c0_i32_0 = arith.constant 0 : i32
    %c0_i32_1 = arith.constant 0 : i32
    %c0_i32_2 = arith.constant 0 : i32
    return %c0_i32, %c0_i32_0, %c0_i32_1 : i32, i32, i32
  }
  func.func @transform_5(%arg0: i32) -> (i32, i32, i32) {
    %c0_i32 = arith.constant 0 : i32
    %c0_i32_0 = arith.constant 0 : i32
    %c0_i32_1 = arith.constant 0 : i32
    %c0_i32_2 = arith.constant 0 : i32
    return %c0_i32, %c0_i32_0, %c0_i32_1 : i32, i32, i32
  }
  func.func @transform_6(%arg0: i32) -> (i32, i32, i32) {
    %c0_i32 = arith.constant 0 : i32
    %c0_i32_0 = arith.constant 0 : i32
    %c0_i32_1 = arith.constant 0 : i32
    return %arg0, %c0_i32, %c0_i32_0 : i32, i32, i32
  }
  func.func @transform_7(%arg0: i32) -> (i32, i32, i32) {
    %c0_i32 = arith.constant 0 : i32
    %c0_i32_0 = arith.constant 0 : i32
    %c0_i32_1 = arith.constant 0 : i32
    return %arg0, %c0_i32, %c0_i32_0 : i32, i32, i32
  }
}

</mosaic_0001>

<bundles_post_ra>
// kernel: tpu_custom_call.1
= control target key start
LH: loop header
LB: loop body
LE: loop exit
PB: predicated region body
PF: predicated region fallthrough
CT: control target
= control target key end

     0   :  { %s2448_s0 = inlined_call_operand.hbm [shape: f32[8,1,32,128], index: 0, kind: input, shape index: {}]   ;;  %s2449_s1 = inlined_call_operand.hbm [shape: f32[8,1,32,128], index: 1, kind: input, shape index: {}]   ;;  %s2450_s2 = inlined_call_operand.hbm [shape: f32[8,1,32,128], index: 2, kind: input, shape index: {}]   ;;  %s2451_s3 = inlined_call_operand.hbm [shape: f32[8,1,32,128], index: 3, kind: input, shape index: {}]   ;;  %s2452_s4 = inlined_call_operand.hbm [shape: bf16[3,32,32], index: 4, kind: input, shape index: {}]   ;;  %s2453_s5 = inlined_call_operand.hbm [shape: bf16[3,128,128], index: 5, kind: input, shape index: {}]   ;;  %s2454_s6 = inlined_call_operand.hbm [shape: f32[8,32,128], index: 6, kind: output, shape index: {0}]   ;;  %s2455_s7 = inlined_call_operand.hbm [shape: f32[8,32,128], index: 7, kind: output, shape index: {1}]  }
   0x1   :  { %2479 = sst [smem:[#allocation27_spill]] %s2448_s0 }
   0x2   :  { %2480 = sst [smem:[#allocation28_spill]] %s2449_s1 }
   0x3   :  { %2481 = sst [smem:[#allocation29_spill]] %s2452_s4 }
   0x4   :  { %2482 = sst [smem:[#allocation30_spill]] %s2454_s6 }
   0x5   :  { %2483 = sst [smem:[#allocation31_spill]] %s2455_s7 }
   0x6   :  { %13 = vsyncpa [#allocation3], 0 }
   0x7   :  { %15 = vsyncpa [#allocation3 + $0x1], 0 }
   0x8   :  { %16 = vsyncpa [#allocation6], 0 }
   0x9   :  { %18 = vsyncpa [#allocation6 + $0x1], 0 }
   0xa   :  { %19 = vsyncpa [#allocation9], 0 }
   0xb   :  { %21 = vsyncpa [#allocation9 + $0x1], 0 }
   0xc   :  { %22 = vsyncpa [#allocation12], 0 }
   0xd   :  { %23 = vsyncpa [#allocation4], 0 }
   0xe   :  { %25 = vsyncpa [#allocation4 + $0x1], 0 }
   0xf   :  { %26 = vsyncpa [#allocation15], 0 }
  0x10   :  { %28 = vsyncpa [#allocation15 + $0x1], 0  ;;  %s2002_s24 = smov 0   ;;  %s2004_s25 = smov 0  }
  0x11   :  { %s2006_s26 = smov 0   ;;  %s2008_s27 = smov 0  }
  0x12 LB: > { %2484 = sst [smem:[#allocation23_spill]] %s1934_s24  ;;  %s2023_s28 = sadd.s32 4294967295, %s1946_s27   ;;  %s1946_s27 = sphi %s2008_s27, %s2523_s27   ;;  %s1942_s26 = sphi %s2006_s26, %s2527_s26   ;;  %s1938_s25 = sphi %s2004_s25, %s2526_s25   ;;  %s1934_s24 = sphi %s2002_s24, %s2525_s24  }
  0x13   : > { %s1331_s29 = sadd.s32 4294967294, %s1946_s27   ;;  %s2027_s30 = sadd.s32 1, %s1946_s27  }
  0x14   : > { %2485 = sst [smem:[#allocation24_spill]] %s2027_s30  ;;  %s41_s8 = sadd.s32 1, %s1942_s26 }
  0x15   : > { %s38_s9 = ssub.s32 %s1946_s27, %s2027_s30  ;;  %p48_p0 = scmp.ne.s32.totalorder %s1942_s26, %s1938_s25 }
  0x16   : > { %p39_p1 = scmp.eq.s32.totalorder %s38_s9, 0  ;;  %p49_p2 = scmp.eq.s32.totalorder %s1946_s27, 0 }
  0x17   : > { %p54_p3 = scmp.ne.s32.totalorder %s1938_s25, %s1934_s24  ;;  %p2457_p4 = scmp.eq.s32.totalorder %s2023_s28, 0 }
  0x18   : > { %s2039_s10 = scalar_select %p39_p1, %s1942_s26, %s41_s8  }
  0x19   : > { %p2041_p5 = por %p49_p2, %p48_p0  ;;  %p2047_p6 = por %p2457_p4, %p54_p3 }
  0x1a   : > { %2486 = sst [smem:[#allocation25_spill]] %s2039_s10  ;;  %p198_p7 = scmp.eq.s32.totalorder %s2023_s28, 7 }
  0x1b   : > { %s2487_s11 = scalar_select %p2041_p5, 1, 0 }
  0x1c   : > { %s2488_s12 = scalar_select %p2047_p6, 1, 0 }
  0x1d   : > { %p204_p8 = scmp.eq.s32.totalorder %s1331_s29, 7  ;;  %p1332_p9 = scmp.ge.s32.totalorder %s1946_s27, 1 }
  0x1e   : > { %p237_p10 = scmp.lt.s32.totalorder %s1946_s27, 9  ;;  %p2054_p11 = por %p198_p7, %p48_p0 }
  0x1f   : > { %p2058_p12 = por %p204_p8, %p54_p3  ;;  %s1948_s16 = smov [#allocation10]  }
  0x20   : > { %s2489_s13 = scalar_select %p2054_p11, 1, 0 }
  0x21   : > { %s2490_s14 = scalar_select %p2058_p12, 1, 0 }
  0x22   : > { %p2062_p13 = pnand %p1332_p9, %p237_p10  ;;  %s249_s17 = sshll.u32 %s1948_s16, 4  ;;  %s250_s17 = int_to_ptr.vmem [resolvable:$true] %s249_s17 }
  0x23   : > { %2491 = sst [smem:[#allocation26_spill]] %s2490_s14  ;;  %s2456_s19 = sand.u32 1, %s1942_s26  }
  0x24   : > { %s2492_s15 = scalar_select %p2062_p13, 1, 0 }
  0x25   : > { %p1553_p1 = pneg %p2062_p13  ;;  %s2078_s20 = sshll.u32 %s2456_s19, 5 }
  0x26   : > { %s2494_s4 = sld [smem:[#allocation29_spill]] }
  0x27   : > { %p2070_p2 = pnand %p1553_p1, %p2457_p4 }
  0x29   : > { %s2493_s18 = scalar_select %p2070_p2, 1, 0 }
  0x2a   : > { %p2466_p7 = pneg %p2070_p2 }
  0x2c   : > { %s1656_s23 = scalar_lea.hbm %s2494_s4, 768 }
  0x2d   : > { %p1657_p3 = scmp.ne.s32.totalorder %s2494_s4, %s1656_s23  ;;  %p1663_p10 = scmp.lt.u32.totalorder %s1656_s23, %s2494_s4 }
  0x2f   : > { %p1659_p8 = pnand %p2466_p7, %p1657_p3 }
  0x31   : > { %p1660_p9 = pneg %p1659_p8 }
  0x33   : > { %p1665_p1 = pnand %p1663_p10, %p1660_p9 }
  0x35   : > { %1668 = shalt.err (!%p1665_p1)
}
  0x36   : > { %s1669_s19 = scalar_lea.vmem %s250_s17, 768  ;;  %p1677_p11 = scmp.lt.s32.totalorder %s250_s17, %s250_s17 }
  0x37   : > { %p1670_p4 = scmp.ne.s32.totalorder %s250_s17, %s1669_s19  ;;  %p1678_p6 = scmp.lt.s32.totalorder %s1669_s19, %s1669_s19 }
  0x39   : > { %p1672_p0 = pnand %p1670_p4, %p2466_p7  ;;  %p1679_p13 = por %p1678_p6, %p1677_p11 }
  0x3b   : > { %p1673_p12 = pneg %p1672_p0 }
  0x3d   : > { %p1680_p5 = pnand %p1679_p13, %p1673_p12 }
  0x3f   : > { %1683 = shalt.err (!%p1680_p5)
}
  0x40   : > { %s2463_s21 = smov 64   ;;  %s2464_s22 = smov 4  }
  0x41   : > { %1556 = dma.hbm_to_vmem [thread:$0]  (!%p2070_p2), %s2494_s4, 768, %s250_s17, [#allocation9], %s2463_s21, %s2463_s21, %s2464_s22  }
  0x42   : > { %s2106_s19 = sshll.u32 %s1946_s27, 9  ;;  %p2495_p4 = scmp.ne.s32.totalorder %s2487_s11, 0 }
  0x43   : > { %p2496_p5 = scmp.lt.s32.totalorder %s1946_s27, 8  ;;  %s2465_s9 = sand.u32 1, %s1946_s27  }
  0x44   : > { %s2498_s1 = sld [smem:[#allocation28_spill]]  ;;  %s301_s17 = scalar_lea.vmem [#allocation5], %s2078_s20 }
  0x45   : > { %p2112_p6 = pnand %p2496_p5, %p2495_p4  ;;  %s308_s23 = sshll.u32 %s301_s17, 4  ;;  %s2124_s23 = int_to_ptr.vmem [resolvable:$true] %s308_s23 }
  0x46   : > { %s2128_s11 = scalar_lea.sflag [#allocation6], %s2465_s9 }
  0x47   : > { %s2497_s8 = scalar_select %p2112_p6, 1, 0 }
  0x48   : > { %p2134_p12 = pneg %p2112_p6 }
  0x4a   : > { %s2121_s30 = scalar_lea.hbm %s2498_s1, %s2106_s19  ;;  %s1689_s17 = scalar_lea.hbm %s2498_s1, 4096 }
  0x4b   : > { %s1684_s29 = scalar_lea.hbm %s2121_s30, 512  ;;  %p1690_p3 = scmp.lt.u32.totalorder %s2121_s30, %s2498_s1 }
  0x4c   : > { %p1685_p11 = scmp.ne.s32.totalorder %s2121_s30, %s1684_s29  ;;  %p1691_p8 = scmp.lt.u32.totalorder %s1689_s17, %s1684_s29 }
  0x4d   : > { %s2499_s21 = scalar_select %p2134_p12, 1, 0 }
  0x4e   : > { %p1687_p13 = pnand %p2134_p12, %p1685_p11  ;;  %p1692_p9 = por %p1691_p8, %p1690_p3 }
  0x4f   : > { %p1693_p10 = scmp.lt.u32.totalorder %s1684_s29, %s2121_s30 }
  0x50   : > { %p1688_p0 = pneg %p1687_p13 }
  0x51   : > { %p1694_p1 = por %p1693_p10, %p1692_p9 }
  0x53   : > { %p1695_p4 = pnand %p1694_p1, %p1688_p0 }
  0x55   : > { %1698 = shalt.err (!%p1695_p4)
}
  0x56   : > { %s1699_s9 = scalar_lea.vmem %s2124_s23, 512  ;;  %s1951_s10 = smov [#allocation5]  }
  0x57   : > { %p1700_p5 = scmp.ne.s32.totalorder %s2124_s23, %s1699_s9  ;;  %s1704_s16 = sshll.u32 %s1951_s10, 4  ;;  %s1705_s16 = int_to_ptr.vmem [resolvable:$false] %s1704_s16 }
  0x58   : > { %s1706_s4 = scalar_lea.vmem %s1705_s16, 1024  ;;  %p1707_p7 = scmp.lt.s32.totalorder %s2124_s23, %s1705_s16 }
  0x59   : > { %p1702_p11 = pnand %p1700_p5, %p2134_p12  ;;  %p1708_p2 = scmp.lt.s32.totalorder %s1706_s4, %s1699_s9 }
  0x5b   : > { %p1703_p13 = pneg %p1702_p11  ;;  %p1709_p3 = por %p1708_p2, %p1707_p7 }
  0x5d   : > { %p1710_p8 = pnand %p1709_p3, %p1703_p13 }
  0x5f   : > { %1713 = shalt.err (!%p1710_p8)
}
  0x60   : > { %s2477_s22 = smov 128   ;;  %s1953_s29 = smov 8  }
  0x61   : > { %1566 = dma.hbm_to_vmem [thread:$0]  (!%p2112_p6), %s2121_s30, 512, %s2124_s23, %s2128_s11, %s2477_s22, %s2477_s22, %s1953_s29  }
  0x62   : > { %s1954_s17 = smov [#allocation11]   ;;  %s2500_s0 = sld [smem:[#allocation27_spill]] }
  0x63   : > { %s262_s10 = sshll.u32 %s1954_s17, 4  ;;  %s1714_s24 = scalar_lea.hbm %s2453_s5, 3072  ;;  %s263_s10 = int_to_ptr.vmem [resolvable:$true] %s262_s10 }
  0x64   : > { %p1715_p2 = scmp.ne.s32.totalorder %s2453_s5, %s1714_s24  ;;  %p2501_p7 = scmp.ne.s32.totalorder %s2493_s18, 0 }
  0x65   : > { %p1721_p1 = scmp.lt.u32.totalorder %s1714_s24, %s2453_s5 }
  0x66   : > { %p2502_p0 = pneg %p2501_p7 }
  0x68   : > { %s2165_s4 = scalar_lea.hbm %s2500_s0, %s2106_s19  ;;  %p1717_p9 = pnand %p1715_p2, %p2502_p0 }
  0x6a   : > { %p1718_p10 = pneg %p1717_p9 }
  0x6c   : > { %p1723_p4 = pnand %p1721_p1, %p1718_p10 }
  0x6e   : > { %1726 = shalt.err (!%p1723_p4)
}
  0x6f   : > { %s1727_s17 = scalar_lea.vmem %s263_s10, 3072  ;;  %p2503_p11 = pmov %p2502_p0 }
  0x70   : > { %p1728_p5 = scmp.ne.s32.totalorder %s263_s10, %s1727_s17  ;;  %p1735_p8 = scmp.lt.s32.totalorder %s263_s10, %s263_s10 }
  0x71   : > { %p1736_p6 = scmp.lt.s32.totalorder %s1727_s17, %s1727_s17 }
  0x72   : > { %p1730_p13 = pnand %p1728_p5, %p2503_p11 }
  0x73   : > { %p1737_p12 = por %p1736_p6, %p1735_p8 }
  0x74   : > { %p1731_p3 = pneg %p1730_p13 }
  0x76   : > { %p1738_p0 = pnand %p1737_p12, %p1731_p3 }
  0x78   : > { %1741 = shalt.err (!%p1738_p0)
}
  0x79   : > { %s2504_s1 = smov 4   ;;  %s2505_s6 = smov 64  }
  0x7a   : > { %1559 = dma.hbm_to_vmem [thread:$0]  (!%p2501_p7), %s2453_s5, 3072, %s263_s10, [#allocation12], %s2505_s6, %s2505_s6, %s2504_s1  }
  0x7b   : > { %s280_s14 = scalar_lea.vmem [#allocation2], %s2078_s20  ;;  %s2197_s30 = scalar_lea.hbm %s2450_s2, %s2106_s19 }
  0x7c   : > { %s287_s9 = sshll.u32 %s280_s14, 4  ;;  %s2506_s23 = sand.u32 1, %s1942_s26   ;;  %s2191_s9 = int_to_ptr.vmem [resolvable:$true] %s287_s9 }
  0x7d   : > { %s2201_s17 = scalar_lea.sflag [#allocation3], %s2506_s23  ;;  %s1742_s7 = scalar_lea.hbm %s2165_s4, 512 }
  0x7e   : > { %p1743_p6 = scmp.ne.s32.totalorder %s2165_s4, %s1742_s7  ;;  %p2507_p12 = scmp.ne.s32.totalorder %s2499_s21, 0 }
  0x7f   : > { %s1747_s10 = scalar_lea.hbm %s2500_s0, 4096  ;;  %p1748_p7 = scmp.lt.u32.totalorder %s2165_s4, %s2500_s0 }
  0x80   : > { %p1745_p2 = pnand %p1743_p6, %p2507_p12  ;;  %p1749_p10 = scmp.lt.u32.totalorder %s1747_s10, %s1742_s7 }
  0x81   : > { %p1751_p4 = scmp.lt.u32.totalorder %s1742_s7, %s2165_s4 }
  0x82   : > { %p1746_p9 = pneg %p1745_p2  ;;  %p1750_p1 = por %p1749_p10, %p1748_p7 }
  0x84   : > { %p1752_p5 = por %p1751_p4, %p1750_p1 }
  0x86   : > { %p1753_p11 = pnand %p1752_p5, %p1746_p9 }
  0x88   : > { %1756 = shalt.err (!%p1753_p11)
}
  0x89   : > { %s1757_s14 = scalar_lea.vmem %s2191_s9, 512  ;;  %s1955_s22 = smov [#allocation2]  }
  0x8a   : > { %p1758_p13 = scmp.ne.s32.totalorder %s2191_s9, %s1757_s14  ;;  %s1762_s18 = sshll.u32 %s1955_s22, 4  ;;  %s1763_s18 = int_to_ptr.vmem [resolvable:$false] %s1762_s18 }
  0x8b   : > { %s1764_s16 = scalar_lea.vmem %s1763_s18, 1024  ;;  %p1765_p0 = scmp.lt.s32.totalorder %s2191_s9, %s1763_s18 }
  0x8c   : > { %p1760_p3 = pnand %p1758_p13, %p2507_p12  ;;  %p1766_p6 = scmp.lt.s32.totalorder %s1764_s16, %s1757_s14 }
  0x8e   : > { %p1761_p8 = pneg %p1760_p3  ;;  %p1767_p2 = por %p1766_p6, %p1765_p0 }
  0x90   : > { %p1768_p7 = pnand %p1767_p2, %p1761_p8 }
  0x92   : > { %1771 = shalt.err (!%p1768_p7)
}
  0x93   : > { %p2508_p9 = scmp.ne.s32.totalorder %s2497_s8, 0  ;;  %s2509_s23 = smov 128  }
  0x94   : > { %s322_s7 = scalar_lea.vmem [#allocation7], %s2078_s20  ;;  %s2235_s6 = scalar_lea.hbm %s2451_s3, %s2106_s19 }
  0x95   : > { %1563 = dma.hbm_to_vmem [thread:$0]  (!%p2508_p9), %s2165_s4, 512, %s2191_s9, %s2201_s17, %s2509_s23, %s2509_s23, %s1953_s29  }
  0x96   : > { %s329_s24 = sshll.u32 %s322_s7, 4  ;;  %s1772_s14 = scalar_lea.hbm %s2197_s30, 512  ;;  %s2229_s24 = int_to_ptr.vmem [resolvable:$true] %s329_s24 }
  0x97   : > { %p1773_p10 = scmp.ne.s32.totalorder %s2197_s30, %s1772_s14  ;;  %s1777_s16 = scalar_lea.hbm %s2450_s2, 4096 }
  0x98   : > { %p1778_p5 = scmp.lt.u32.totalorder %s2197_s30, %s2450_s2  ;;  %p1779_p11 = scmp.lt.u32.totalorder %s1777_s16, %s1772_s14 }
  0x99   : > { %p1775_p1 = pnand %p1773_p10, %p2507_p12  ;;  %p1781_p3 = scmp.lt.u32.totalorder %s1772_s14, %s2197_s30 }
  0x9a   : > { %p1780_p13 = por %p1779_p11, %p1778_p5 }
  0x9b   : > { %p1776_p4 = pneg %p1775_p1 }
  0x9c   : > { %p1782_p8 = por %p1781_p3, %p1780_p13 }
  0x9e   : > { %p1783_p0 = pnand %p1782_p8, %p1776_p4 }
  0xa0   : > { %1786 = shalt.err (!%p1783_p0)
}
  0xa1   : > { %s1787_s19 = scalar_lea.vmem %s2229_s24, 512  ;;  %s1956_s9 = smov [#allocation7]  }
  0xa2   : > { %p1788_p6 = scmp.ne.s32.totalorder %s2229_s24, %s1787_s19  ;;  %s1792_s17 = sshll.u32 %s1956_s9, 4  ;;  %s1793_s17 = int_to_ptr.vmem [resolvable:$false] %s1792_s17 }
  0xa3   : > { %s1794_s0 = scalar_lea.vmem %s1793_s17, 1024  ;;  %p1795_p10 = scmp.lt.s32.totalorder %s2229_s24, %s1793_s17 }
  0xa4   : > { %p1790_p2 = pnand %p1788_p6, %p2507_p12  ;;  %p1796_p1 = scmp.lt.s32.totalorder %s1794_s0, %s1787_s19 }
  0xa6   : > { %p1791_p7 = pneg %p1790_p2  ;;  %p1797_p5 = por %p1796_p1, %p1795_p10 }
  0xa8   : > { %p1798_p11 = pnand %p1797_p5, %p1791_p7 }
  0xaa   : > { %1801 = shalt.err (!%p1798_p11)
}
  0xab   : > { %1569 = dma.hbm_to_vmem [thread:$0]  (!%p2508_p9), %s2197_s30, 512, %s2229_s24, %s2128_s11, %s2509_s23, %s2509_s23, %s1953_s29  }
  0xac   : > { %s343_s7 = scalar_lea.vmem [#allocation8], %s2078_s20  ;;  %s2510_s1 = sand.u32 1, %s1946_s27  }
  0xad   : > { %s350_s10 = sshll.u32 %s343_s7, 4  ;;  %s2267_s14 = scalar_lea.sflag [#allocation9], %s2510_s1  ;;  %s2263_s10 = int_to_ptr.vmem [resolvable:$true] %s350_s10 }
  0xae   : > { %s1802_s22 = scalar_lea.hbm %s2235_s6, 512  ;;  %s1807_s4 = scalar_lea.hbm %s2451_s3, 4096 }
  0xaf   : > { %p1803_p4 = scmp.ne.s32.totalorder %s2235_s6, %s1802_s22  ;;  %p1808_p8 = scmp.lt.u32.totalorder %s2235_s6, %s2451_s3 }
  0xb0   : > { %p1809_p0 = scmp.lt.u32.totalorder %s1807_s4, %s1802_s22  ;;  %p1811_p2 = scmp.lt.u32.totalorder %s1802_s22, %s2235_s6 }
  0xb1   : > { %p1805_p13 = pnand %p1803_p4, %p2507_p12 }
  0xb2   : > { %p1810_p6 = por %p1809_p0, %p1808_p8 }
  0xb3   : > { %p1806_p3 = pneg %p1805_p13 }
  0xb4   : > { %p1812_p7 = por %p1811_p2, %p1810_p6 }
  0xb6   : > { %p1813_p10 = pnand %p1812_p7, %p1806_p3 }
  0xb8   : > { %1816 = shalt.err (!%p1813_p10)
}
  0xb9   : > { %s1817_s20 = scalar_lea.vmem %s2263_s10, 512  ;;  %s1957_s11 = smov [#allocation8]  }
  0xba   : > { %p1818_p1 = scmp.ne.s32.totalorder %s2263_s10, %s1817_s20  ;;  %s1822_s30 = sshll.u32 %s1957_s11, 4  ;;  %s1823_s30 = int_to_ptr.vmem [resolvable:$false] %s1822_s30 }
  0xbb   : > { %s1824_s24 = scalar_lea.vmem %s1823_s30, 1024  ;;  %p1825_p4 = scmp.lt.s32.totalorder %s2263_s10, %s1823_s30 }
  0xbc   : > { %p1820_p5 = pnand %p1818_p1, %p2507_p12  ;;  %p1826_p13 = scmp.lt.s32.totalorder %s1824_s24, %s1817_s20 }
  0xbe   : > { %p1821_p11 = pneg %p1820_p5  ;;  %p1827_p8 = por %p1826_p13, %p1825_p4 }
  0xc0   : > { %p1828_p0 = pnand %p1827_p8, %p1821_p11 }
  0xc2   : > { %1831 = shalt.err (!%p1828_p0)
}
  0xc3   : > { %1572 = dma.hbm_to_vmem [thread:$0]  (!%p2508_p9), %s2235_s6, 512, %s2263_s10, %s2267_s14, %s2509_s23, %s2509_s23, %s1953_s29  }
  0xc4   : > { %p2511_p12 = scmp.ne.s32.totalorder %s2492_s15, 0 }
  0xc5   : > { %s2297_s21 = sand.u32 (!%p2511_p12), 1, %s1938_s25   ;;  %p2512_p3 = scmp.ne.s32.totalorder (!%p2511_p12), %s2488_s12, 0 }
  0xc6   : > { %362 = sbr.rel (%p2511_p12) target bundleno = 751 (0x2ef), region = 44  ;;  %s2300_s17 = sshll.u32 (!%p2511_p12), %s2297_s21, 5 }
  0xc7   : > { %s365_s8 = scalar_lea.sflag (!%p2511_p12), [#allocation3], %s2297_s21  ;;  %s368_s0 = scalar_lea.vmem (!%p2511_p12), [#allocation2], %s2300_s17 }
  0xcd   : > { %1905 = dma.done.wait (%p2512_p3), %s365_s8, 512  }
  0xce   : > { %1907 = vsyncadd (%p2512_p3), %s365_s8, 4294966784  ;;  %s373_s15 = sand.u32 1, %s2023_s28   ;;  %s377_s23 = scalar_lea.vmem [#allocation5], %s2300_s17 }
  0xcf   : > { %s374_s29 = scalar_lea.sflag [#allocation6], %s373_s15 }
  0xd0   : > { %1909 = dma.done.wait (%p2512_p3), %s374_s29, 1024  }
  0xd1   : > { %1911 = vsyncadd (%p2512_p3), %s374_s29, 4294966272  ;;  %s2315_s6 = scalar_lea.vmem [#allocation7], %s2300_s17  ;;  %s392_s7 = scalar_lea.sflag [#allocation9], %s373_s15 }
  0xd2   : > { %s2318_s10 = scalar_lea.vmem [#allocation8], %s2300_s17 }
  0xd3   : > { %1913 = dma.done.wait (%p2512_p3), %s392_s7, 512  }
  0xd4   : > { %1915 = vsyncadd (%p2512_p3), %s392_s7, 4294966784  ;;  %p2513_p9 = scmp.eq.s32.totalorder %s2023_s28, 0 }
  0xd6   : > { %1917 = dma.done.wait (%p2513_p9), [#allocation9], 768   ;;  %p2514_p6 = pmov %p2513_p9 }
  0xd8   : > { %1919 = vsyncadd (%p2514_p6), [#allocation9], 4294966528  ;;  %p2515_p2 = pmov %p2514_p6 }
  0xda   : > { %1921 = dma.done.wait (%p2515_p2), [#allocation12], 3072   ;;  %p2516_p7 = pmov %p2515_p2 }
  0xdb   : > { %v519_v0 = vld [vmem:[%s368_s0] sm:$0xff]  ;;  %v520_v1 = vld [vmem:[%s368_s0 + $0x8] sm:$0xff]  ;;  %v521_v5 = vld [vmem:[%s368_s0 + $0x10] sm:$0xff]  ;;  %vm547_vm0 = vcmask 261120   ;;  %s2347_s12 = scalar_lea.vmem [#allocation13], %s2300_s17  ;;  %s2351_s14 = scalar_lea.vmem [#allocation14], %s2300_s17 }
  0xdc   : > { %1923 = vsyncadd (%p2516_p7), [#allocation12], 4294964224  ;;  %v523_v2 = vld [vmem:[%s377_s23] sm:$0xff]  ;;  %v524_v3 = vld [vmem:[%s377_s23 + $0x8] sm:$0xff]  ;;  %v527_v4 = vpack.c.bf16 %v520_v1, %v519_v0  ;;  %s1125_s1 = sshll.u32 %s2347_s12, 4  ;;  %s1141_s22 = sshll.u32 %s2351_s14, 4  ;;  %s2355_s1 = int_to_ptr.vmem [resolvable:$true] %s1125_s1  ;;  %s2357_s22 = int_to_ptr.vmem [resolvable:$true] %s1141_s22 }
  0xdd   : > { %v522_v6 = vld [vmem:[%s368_s0 + $0x18] sm:$0xff]  ;;  %v1626_v8 = vld [vmem:[#allocation10] sm:$0xff]   ;;  %v529_v9 = vpack.c.bf16 %v524_v3, %v523_v2  ;;  %v525_v10 = vld [vmem:[%s377_s23 + $0x10] sm:$0xff]  ;;  %v531_v14 = vadd.f32 %v523_v2, %v519_v0  ;;  %v532_v15 = vadd.f32 %v524_v3, %v520_v1  ;;  %s1405_s18 = sshll.u32 %s2023_s28, 9  ;;  %s2517_s4 = sld [smem:[#allocation30_spill]] }
  0xde   : > { %v528_v7 = vpack.c.bf16 %v522_v6, %v521_v5  ;;  %1449 = vmatprep.subr.bf16.mxu0 %v527_v4  ;;  %1453 = vmatprep.mubr.msk.bf16.mxu0 %vm547_vm0, %v1626_v8  ;;  %v526_v11 = vld [vmem:[%s377_s23 + $0x18] sm:$0xff]  ;;  %v1627_v12 = vld [vmem:[#allocation10 + $0x8] sm:$0xff]   ;;  %v1628_v13 = vld [vmem:[#allocation10 + $0x10] sm:$0xff]   ;;  %v533_v21 = vadd.f32 %v525_v10, %v521_v5  ;;  %s2518_s11 = sld [smem:[#allocation31_spill]]  ;;  %s1107_s24 = scalar_lea.sflag [#allocation4], %s2297_s21 }
  0xdf   : > { %1450 = vmatpush3.bf16.msra.mxu0 %v527_v4  ;;  %v530_v16 = vpack.c.bf16 %v526_v11, %v525_v10  ;;  %v1632_v17 = vld [vmem:[#allocation11] sm:$0xff]   ;;  %v1633_v18 = vld [vmem:[#allocation11 + $0x8] sm:$0xff]   ;;  %v535_v20 = vpack.c.bf16 %v532_v15, %v531_v14  ;;  %v534_v22 = vadd.f32 %v526_v11, %v522_v6  ;;  %v1630_v23 = vld [vmem:[#allocation10 + $0x20] sm:$0xff]   ;;  %s1832_s17 = scalar_lea.vmem %s2355_s1, 512  ;;  %p2519_p1 = scmp.ne.s32.totalorder %s2489_s13, 0 }
  0xe0   : > { %1451 = vmatprep.subr.bf16.mxu0 %v528_v7  ;;  %1473 = vmatprep.subr.bf16.mxu1 %v1632_v17  ;;  %v1629_v19 = vld [vmem:[#allocation10 + $0x18] sm:$0xff]   ;;  %v1634_v24 = vld [vmem:[#allocation11 + $0x10] sm:$0xff]   ;;  %v1636_v25 = vld [vmem:[#allocation11 + $0x18] sm:$0xff]   ;;  %p1833_p10 = scmp.ne.s32.totalorder %s2355_s1, %s1832_s17  ;;  %s1958_s8 = smov [#allocation13]  }
  0xe1   : > { %1474 = vmatpush3.bf16.msra.mxu1 %v1632_v17  ;;  %v536_v26 = vpack.c.bf16 %v534_v22, %v533_v21  ;;  %v1635_v27 = vld [vmem:[#allocation11 + $0x40] sm:$0xff]   ;;  %v1631_v28 = vld [vmem:[#allocation10 + $0x28] sm:$0xff]   ;;  %v1637_v29 = vld [vmem:[#allocation11 + $0x48] sm:$0xff]   ;;  %s1836_s0 = sshll.u32 %s1958_s8, 4  ;;  %s1837_s0 = int_to_ptr.vmem [resolvable:$false] %s1836_s0 }
  0xe2   : > { %1475 = vmatprep.subr.bf16.mxu1 %v1633_v18  ;;  %v1638_v30 = vld [vmem:[#allocation11 + $0x20] sm:$0xff]   ;;  %v1639_v31 = vld [vmem:[#allocation11 + $0x50] sm:$0xff]   ;;  %v1640_v32 = vld [vmem:[#allocation11 + $0x28] sm:$0xff]   ;;  %p1834_p5 = pnand %p1833_p10, %p2519_p1  ;;  %s1838_s15 = scalar_lea.vmem %s1837_s0, 1024 }
  0xe3   : > { %1452 = vmatpush3.bf16.msra.mxu0 %v528_v7  ;;  %v1641_v33 = vld [vmem:[#allocation11 + $0x58] sm:$0xff]   ;;  %v1642_v34 = vld [vmem:[#allocation11 + $0x30] sm:$0xff]   ;;  %v1643_v35 = vld [vmem:[#allocation11 + $0x60] sm:$0xff]   ;;  %s2364_s19 = scalar_lea.hbm %s2517_s4, %s1405_s18  ;;  %p1839_p4 = scmp.lt.s32.totalorder %s2355_s1, %s1837_s0 }
  0xe4   : > { %1457 = vmatprep.subr.bf16.mxu0 %v529_v9  ;;  %v1644_v36 = vld [vmem:[#allocation11 + $0x38] sm:$0xff]   ;;  %v1645_v37 = vld [vmem:[#allocation11 + $0x68] sm:$0xff]   ;;  %v1646_v38 = vld [vmem:[#allocation11 + $0x80] sm:$0xff]   ;;  %s2373_s30 = scalar_lea.hbm %s2518_s11, %s1405_s18  ;;  %p1835_p11 = pneg %p1834_p5 }
  0xe5   : > { %1476 = vmatpush3.bf16.msra.mxu1 %v1633_v18  ;;  %v1647_v39 = vld [vmem:[#allocation11 + $0x70] sm:$0xff]   ;;  %v1649_v40 = vld [vmem:[#allocation11 + $0x78] sm:$0xff]   ;;  %v1648_v55 = vld [vmem:[#allocation11 + $0x88] sm:$0xff]   ;;  %p1840_p13 = scmp.lt.s32.totalorder %s1838_s15, %s1832_s17 }
  0xe6   : > { %1454 = vmatmul.mubr.msk.bf16.vlgmr.msra.gmra.mrb[0].mxu0 %vm547_vm0, %v1627_v12  ;;  %1477 = vmatprep.subr.bf16.mxu1 %v1634_v24  ;;  %v1650_v0 = vld [vmem:[#allocation11 + $0x90] sm:$0xff]   ;;  %v1652_v14 = vld [vmem:[#allocation11 + $0xa0] sm:$0xff]   ;;  %v1653_v15 = vld [vmem:[#allocation11 + $0xa8] sm:$0xff]  }
  0xe7   : > { %1458 = vmatpush3.bf16.msra.mxu0 %v529_v9  ;;  %1461 = vmatprep.mubr.msk.bf16.mxu0 %vm547_vm0, %v1628_v13  ;;  %v1651_v9 = vld [vmem:[#allocation11 + $0x98] sm:$0xff]   ;;  %p1841_p8 = por %p1840_p13, %p1839_p4 }
  0xe8   : > { %1459 = vmatprep.subr.bf16.mxu0 %v530_v16  ;;  %v1655_v17 = vld [vmem:[#allocation11 + $0xb8] sm:$0xff]  }
  0xe9   : > { %1478 = vmatpush3.bf16.msra.mxu1 %v1634_v24  ;;  %p1842_p0 = pnand %p1841_p8, %p1835_p11 }
  0xea   : > { %1479 = vmatprep.subr.bf16.mxu1 %v1636_v25 }
  0xeb   : > { %1460 = vmatpush3.bf16.msra.mxu0 %v530_v16  ;;  %v1654_v16 = vld [vmem:[#allocation11 + $0xb0] sm:$0xff]  }
  0xec   : > { %1465 = vmatprep.subr.bf16.mxu0 %v535_v20 }
  0xed   : > { %1480 = vmatpush3.bf16.msra.mxu1 %v1636_v25 }
  0xee   : > { %1462 = vmatmul.mubr.msk.bf16.vlgmr.msra.gmra.mrb[4].mxu0 %vm547_vm0, %v1629_v19  ;;  %1481 = vmatprep.subr.bf16.mxu1 %v1638_v30 }
  0xef   : > { %1466 = vmatpush3.bf16.msra.mxu0 %v535_v20  ;;  %1469 = vmatprep.mubr.msk.bf16.mxu0 %vm547_vm0, %v1630_v23 }
  0xf0   : > { %1467 = vmatprep.subr.bf16.mxu0 %v536_v26 }
  0xf1   : > { %1482 = vmatpush3.bf16.msra.mxu1 %v1638_v30  ;;  %v1060_v30 = vld [vmem:[%s2315_s6 + $0x10] sm:$0xff] }
  0xf2   : > { %1483 = vmatprep.subr.bf16.mxu1 %v1640_v32 }
  0xf3   : > { %1468 = vmatpush3.bf16.msra.mxu0 %v536_v26 }
  0xf4   : > { %1493 = vmatprep.subr.bf16.mxu0 %v1635_v27 }
  0xf5   : > { %1484 = vmatpush3.bf16.msra.mxu1 %v1640_v32  ;;  %v1058_v32 = vld [vmem:[%s2315_s6] sm:$0xff] }
  0xf6   : > { %1470 = vmatmul.mubr.msk.bf16.vlgmr.msra.gmra.mrb[8].mxu0 %vm547_vm0, %v1631_v28  ;;  %1485 = vmatprep.subr.bf16.mxu1 %v1642_v34 }
  0xf7   : > { %1494 = vmatpush3.bf16.msra.mxu0 %v1635_v27 }
  0xf8   : > { %1495 = vmatprep.subr.bf16.mxu0 %v1637_v29 }
  0xf9   : > { %1486 = vmatpush3.bf16.msra.mxu1 %v1642_v34 }
  0xfa   : > { %1487 = vmatprep.subr.bf16.mxu1 %v1644_v36 }
  0xfb   : > { %1496 = vmatpush3.bf16.msra.mxu0 %v1637_v29 }
  0xfc   : > { %1497 = vmatprep.subr.bf16.mxu0 %v1639_v31 }
  0xfd   : > { %1488 = vmatpush3.bf16.msra.mxu1 %v1644_v36  ;;  %v1065_v36 = vld [vmem:[%s2318_s10 + $0x18] sm:$0xff] }
  0xfe   : > { %1513 = vmatprep.subr.bf16.mxu1 %v1646_v38 }
  0xff   : > { %1498 = vmatpush3.bf16.msra.mxu0 %v1639_v31  ;;  %v1064_v31 = vld [vmem:[%s2318_s10 + $0x10] sm:$0xff] }
 0x100   : > { %1499 = vmatprep.subr.bf16.mxu0 %v1641_v33 }
 0x103   : > { %1500 = vmatpush3.bf16.msra.mxu0 %v1641_v33  ;;  %v1062_v33 = vld [vmem:[%s2318_s10] sm:$0xff] }
 0x104   : > { %1501 = vmatprep.subr.bf16.mxu0 %v1643_v35 }
 0x107   : > { %1502 = vmatpush3.bf16.msra.mxu0 %v1643_v35  ;;  %v1061_v35 = vld [vmem:[%s2315_s6 + $0x18] sm:$0xff] }
 0x108   : > { %1503 = vmatprep.subr.bf16.mxu0 %v1645_v37 }
 0x10b   : > { %1504 = vmatpush3.bf16.msra.mxu0 %v1645_v37 }
 0x10c   : > { %1505 = vmatprep.subr.bf16.mxu0 %v1647_v39 }
 0x10f   : > { %1506 = vmatpush3.bf16.msra.mxu0 %v1647_v39 }
 0x110   : > { %1507 = vmatprep.subr.bf16.mxu0 %v1649_v40 }
 0x113   : > { %1508 = vmatpush3.bf16.msra.mxu0 %v1649_v40 }
 0x1b9   : > { %v1455_v41 = vpop.f32.mrb[0].mxu0 }
 0x1ba   : > { %v588_v42 = vpop.f32.mrb[1].mxu0 }
 0x1bb   : > { %v1456_v43 = vpop.f32.mrb[2].mxu0 }
 0x1bc   : > { %v591_v44 = vpop.f32.mrb[3].mxu0 }
 0x1c1   : > { %v1463_v45 = vpop.f32.mrb[4].mxu0 }
 0x1c2   : > { %v735_v46 = vsub.f32 %v1455_v41, %v1463_v45  ;;  %v653_v47 = vpop.f32.mrb[5].mxu0 }
 0x1c3   : > { %v733_v48 = vsub.f32 %v588_v42, %v653_v47  ;;  %v1464_v49 = vpop.f32.mrb[6].mxu0 }
 0x1c4   : > { %v736_v50 = vsub.f32 %v1456_v43, %v1464_v49  ;;  %v656_v51 = vpop.f32.mrb[7].mxu0 }
 0x1c5   : > { %v734_v52 = vsub.f32 %v591_v44, %v656_v51 }
 0x1c6   : > { %v746_v53 = vpack.c.bf16 %v736_v50, %v735_v46 }
 0x1c7   : > { %v745_v54 = vpack.c.bf16 %v734_v52, %v733_v48 }
 0x1c9   : > { %v1471_v56 = vpop.f32.mrb[8].mxu0  ;;  %1489 = vmatprep.mubr.bf16.mxu1 %v745_v54 }
 0x1ca   : > { %v739_v57 = vsub.f32 %v1471_v56, %v1455_v41  ;;  %v718_v58 = vpop.f32.mrb[9].mxu0  ;;  %1490 = vmatmul.mubr.bf16.vlgmr.msra.gmra.mrb[0].mxu1 %v746_v53  ;;  %v1059_v41 = vld [vmem:[%s2315_s6 + $0x8] sm:$0xff] }
 0x1cb   : > { %v737_v59 = vsub.f32 %v718_v58, %v588_v42  ;;  %1514 = vmatpush3.bf16.msra.mxu1 %v1646_v38  ;;  %v1472_v60 = vpop.f32.mrb[10].mxu0 }
 0x1cc   : > { %v743_v61 = vsub.f32 %v739_v57, %v1463_v45  ;;  %v740_v62 = vsub.f32 %v1472_v60, %v1456_v43  ;;  %v721_v63 = vpop.f32.mrb[11].mxu0  ;;  %1515 = vmatprep.subr.bf16.mxu1 %v1648_v55 }
 0x1cd   : > { %v741_v1 = vsub.f32 %v737_v59, %v653_v47  ;;  %v738_v2 = vsub.f32 %v721_v63, %v591_v44 }
 0x1ce   : > { %v751_v3 = vadd.f32 %v743_v61, %v735_v46  ;;  %v744_v4 = vsub.f32 %v740_v62, %v1464_v49  ;;  %v1063_v46 = vld [vmem:[%s2318_s10 + $0x8] sm:$0xff] }
 0x1cf   : > { %v749_v5 = vadd.f32 %v741_v1, %v733_v48  ;;  %v742_v6 = vsub.f32 %v738_v2, %v656_v51  ;;  %1516 = vmatpush3.bf16.msra.mxu1 %v1648_v55 }
 0x1d0   : > { %v748_v7 = vpack.c.bf16 %v744_v4, %v743_v61  ;;  %v752_v8 = vadd.f32 %v744_v4, %v736_v50  ;;  %1517 = vmatprep.subr.bf16.mxu1 %v1650_v0 }
 0x1d1   : > { %v750_v10 = vadd.f32 %v742_v6, %v734_v52  ;;  %v747_v11 = vpack.c.bf16 %v742_v6, %v741_v1 }
 0x1d2   : > { %v754_v12 = vpack.c.bf16 %v752_v8, %v751_v3 }
 0x1d3   : > { %1518 = vmatpush3.bf16.msra.mxu1 %v1650_v0  ;;  %1509 = vmatprep.mubr.bf16.mxu0 %v747_v11  ;;  %v753_v13 = vpack.c.bf16 %v750_v10, %v749_v5 }
 0x1d4   : > { %1510 = vmatmul.mubr.bf16.vlgmr.msra.gmra.mrb[12].mxu0 %v748_v7  ;;  %1519 = vmatprep.subr.bf16.mxu1 %v1651_v9 }
 0x1d5   : > { %1529 = vmatprep.mubr.bf16.mxu1 %v753_v13 }
 0x1d7   : > { %1520 = vmatpush3.bf16.msra.mxu1 %v1651_v9 }
 0x1d8   : > { %1521 = vmatprep.subr.bf16.mxu1 %v1652_v14 }
 0x1db   : > { %1522 = vmatpush3.bf16.msra.mxu1 %v1652_v14 }
 0x1dc   : > { %1523 = vmatprep.subr.bf16.mxu1 %v1653_v15 }
 0x1df   : > { %1524 = vmatpush3.bf16.msra.mxu1 %v1653_v15 }
 0x1e0   : > { %1525 = vmatprep.subr.bf16.mxu1 %v1654_v16 }
 0x1e3   : > { %1526 = vmatpush3.bf16.msra.mxu1 %v1654_v16 }
 0x1e4   : > { %1527 = vmatprep.subr.bf16.mxu1 %v1655_v17 }
 0x1e7   : > { %1528 = vmatpush3.bf16.msra.mxu1 %v1655_v17 }
 0x1ea   : > { %1530 = vmatmul.mubr.bf16.vlgmr.msra.gmra.mrb[4].mxu1 %v754_v12 }
 0x29d   : > { %v1491_v18 = vpop.f32.mrb[0].mxu1 }
 0x29e   : > { %v837_v19 = vpop.f32.mrb[1].mxu1 }
 0x29f   : > { %v1492_v20 = vpop.f32.mrb[2].mxu1 }
 0x2a0   : > { %v840_v21 = vpop.f32.mrb[3].mxu1 }
 0x2a7   : > { %v1511_v22 = vpop.f32.mrb[12].mxu0 }
 0x2a8   : > { %v1048_v23 = vsub.f32 %v1491_v18, %v1511_v22  ;;  %v934_v24 = vpop.f32.mrb[13].mxu0 }
 0x2a9   : > { %v1046_v25 = vsub.f32 %v837_v19, %v934_v24  ;;  %v1512_v26 = vpop.f32.mrb[14].mxu0 }
 0x2aa   : > { %v1049_v27 = vsub.f32 %v1492_v20, %v1512_v26  ;;  %v937_v28 = vpop.f32.mrb[15].mxu0  ;;  %v1068_v39 = vmul.f32 %v1060_v30, %v1048_v23  ;;  %v1092_v40 = vmul.f32 %v1064_v31, %v1048_v23 }
 0x2ab   : > { %v1047_v29 = vsub.f32 %v840_v21, %v937_v28  ;;  %v1066_v44 = vmul.f32 %v1058_v32, %v1046_v25  ;;  %v1090_v45 = vmul.f32 %v1062_v33, %v1046_v25 }
 0x2ac   : > { %v1069_v50 = vmul.f32 %v1061_v35, %v1049_v27  ;;  %v1093_v51 = vmul.f32 %v1065_v36, %v1049_v27 }
 0x2ad   : > { %v1067_v54 = vmul.f32 %v1059_v41, %v1047_v29  ;;  %v1091_v58 = vmul.f32 %v1063_v46, %v1047_v29 }
 0x2bd   : > { %v1531_v34 = vpop.f32.mrb[4].mxu1 }
 0x2be   : > { %v1052_v37 = vsub.f32 %v1531_v34, %v1491_v18  ;;  %v1031_v38 = vpop.f32.mrb[5].mxu1 }
 0x2bf   : > { %v1050_v42 = vsub.f32 %v1031_v38, %v837_v19  ;;  %v1532_v43 = vpop.f32.mrb[6].mxu1 }
 0x2c0   : > { %v1056_v47 = vsub.f32 %v1052_v37, %v1511_v22  ;;  %v1053_v48 = vsub.f32 %v1532_v43, %v1492_v20  ;;  %v1034_v49 = vpop.f32.mrb[7].mxu1 }
 0x2c1   : > { %v1054_v52 = vsub.f32 %v1050_v42, %v934_v24  ;;  %v1051_v53 = vsub.f32 %v1034_v49, %v840_v21 }
 0x2c2   : > { %v1076_v55 = vmul.f32 %v1064_v31, %v1056_v47  ;;  %v1084_v56 = vmul.f32 %v1060_v30, %v1056_v47  ;;  %v1057_v57 = vsub.f32 %v1053_v48, %v1512_v26 }
 0x2c3   : > { %v1074_v59 = vmul.f32 %v1062_v33, %v1054_v52  ;;  %v1082_v60 = vmul.f32 %v1058_v32, %v1054_v52  ;;  %v1055_v61 = vsub.f32 %v1051_v53, %v937_v28 }
 0x2c4   : > { %v1080_v62 = vadd.f32 %v1076_v55, %v1068_v39  ;;  %v1096_v63 = vsub.f32 %v1084_v56, %v1092_v40  ;;  %v1077_v0 = vmul.f32 %v1065_v36, %v1057_v57  ;;  %v1085_v1 = vmul.f32 %v1061_v35, %v1057_v57 }
 0x2c5   : > { %v1078_v2 = vadd.f32 %v1074_v59, %v1066_v44  ;;  %v1094_v3 = vsub.f32 %v1082_v60, %v1090_v45  ;;  %v1075_v4 = vmul.f32 %v1063_v46, %v1055_v61  ;;  %v1083_v5 = vmul.f32 %v1059_v41, %v1055_v61 }
 0x2c6   : > { %1100 = vst [vmem:[%s2347_s12 + $0x10] sm:$0xff] %v1080_v62  ;;  %1104 = vst [vmem:[%s2351_s14 + $0x10] sm:$0xff] %v1096_v63  ;;  %v1081_v6 = vadd.f32 %v1077_v0, %v1069_v50  ;;  %v1097_v7 = vsub.f32 %v1085_v1, %v1093_v51 }
 0x2c7   : > { %1098 = vst [vmem:[%s2347_s12] sm:$0xff] %v1078_v2  ;;  %1102 = vst [vmem:[%s2351_s14] sm:$0xff] %v1094_v3  ;;  %v1079_v8 = vadd.f32 %v1075_v4, %v1067_v54  ;;  %v1095_v9 = vsub.f32 %v1083_v5, %v1091_v58 }
 0x2c8   : > { %1101 = vst [vmem:[%s2347_s12 + $0x18] sm:$0xff] %v1081_v6  ;;  %1105 = vst [vmem:[%s2351_s14 + $0x18] sm:$0xff] %v1097_v7 }
 0x2c9   : > { %1099 = vst [vmem:[%s2347_s12 + $0x8] sm:$0xff] %v1079_v8  ;;  %1103 = vst [vmem:[%s2351_s14 + $0x8] sm:$0xff] %v1095_v9 }
 0x2ca   : > { %1845 = shalt.err (!%p1842_p0)
}
 0x2cb   : > { %s1846_s29 = scalar_lea.hbm %s2364_s19, 512  ;;  %s1850_s7 = scalar_lea.hbm %s2517_s4, 4096 }
 0x2cc   : > { %p1847_p12 = scmp.ne.s32.totalorder %s2364_s19, %s1846_s29  ;;  %p1851_p6 = scmp.lt.u32.totalorder %s2364_s19, %s2517_s4 }
 0x2cd   : > { %p1852_p2 = scmp.lt.u32.totalorder %s1850_s7, %s1846_s29  ;;  %p1854_p10 = scmp.lt.u32.totalorder %s1846_s29, %s2364_s19 }
 0x2ce   : > { %p1848_p3 = pnand %p1847_p12, %p2519_p1 }
 0x2cf   : > { %p1853_p7 = por %p1852_p2, %p1851_p6 }
 0x2d0   : > { %p1849_p9 = pneg %p1848_p3 }
 0x2d1   : > { %p1855_p5 = por %p1854_p10, %p1853_p7 }
 0x2d3   : > { %p1856_p11 = pnand %p1855_p5, %p1849_p9 }
 0x2d5   : > { %1859 = shalt.err (!%p1856_p11)
}
 0x2d6   : > { %s1959_s14 = smov 128   ;;  %s1960_s18 = smov 8  }
 0x2d7   : > { %1549 = dma.vmem_to_hbm [thread:$0]  (%p2519_p1), %s2355_s1, 512, %s2364_s19, %s1107_s24, %s1959_s14, %s1959_s14, %s1960_s18  }
 0x2d8   : > { %s1112_s28 = scalar_lea.sflag [#allocation15], %s2297_s21  ;;  %s1860_s16 = scalar_lea.vmem %s2357_s22, 512 }
 0x2d9   : > { %p1861_p4 = scmp.ne.s32.totalorder %s2357_s22, %s1860_s16  ;;  %s1961_s9 = smov [#allocation14]  }
 0x2da   : > { %s1864_s20 = sshll.u32 %s1961_s9, 4  ;;  %s1865_s20 = int_to_ptr.vmem [resolvable:$false] %s1864_s20 }
 0x2db   : > { %p1862_p13 = pnand %p1861_p4, %p2519_p1  ;;  %s1866_s17 = scalar_lea.vmem %s1865_s20, 1024 }
 0x2dc   : > { %p1867_p0 = scmp.lt.s32.totalorder %s2357_s22, %s1865_s20  ;;  %p1868_p12 = scmp.lt.s32.totalorder %s1866_s17, %s1860_s16 }
 0x2dd   : > { %p1863_p8 = pneg %p1862_p13 }
 0x2de   : > { %p1869_p3 = por %p1868_p12, %p1867_p0 }
 0x2e0   : > { %p1870_p9 = pnand %p1869_p3, %p1863_p8 }
 0x2e2   : > { %1873 = shalt.err (!%p1870_p9)
}
 0x2e3   : > { %s1874_s1 = scalar_lea.hbm %s2373_s30, 512  ;;  %s1878_s8 = scalar_lea.hbm %s2518_s11, 4096 }
 0x2e4   : > { %p1875_p6 = scmp.ne.s32.totalorder %s2373_s30, %s1874_s1  ;;  %p1879_p10 = scmp.lt.u32.totalorder %s2373_s30, %s2518_s11 }
 0x2e5   : > { %p1880_p5 = scmp.lt.u32.totalorder %s1878_s8, %s1874_s1  ;;  %p1882_p4 = scmp.lt.u32.totalorder %s1874_s1, %s2373_s30 }
 0x2e6   : > { %p1876_p2 = pnand %p1875_p6, %p2519_p1 }
 0x2e7   : > { %p1881_p11 = por %p1880_p5, %p1879_p10 }
 0x2e8   : > { %p1877_p7 = pneg %p1876_p2 }
 0x2e9   : > { %p1883_p13 = por %p1882_p4, %p1881_p11 }
 0x2eb   : > { %p1884_p8 = pnand %p1883_p13, %p1877_p7 }
 0x2ed   : > { %1887 = shalt.err (!%p1884_p8)
}
 0x2ee   : > { %1550 = dma.vmem_to_hbm [thread:$0]  (%p2519_p1), %s2357_s22, 512, %s2373_s30, %s1112_s28, %s1959_s14, %s1959_s14, %s1960_s18  }
 0x2ef PF: > { %s2520_s29 = sld [smem:[#allocation23_spill]]  ;;  %s2521_s23 = sld [smem:[#allocation26_spill]] }
 0x2f0   : > { %p1585_p0 = scmp.ge.s32.totalorder %s1946_s27, 2 }
 0x2f5   : > { %s1156_s6 = sand.u32 1, %s2520_s29   ;;  %p2522_p12 = scmp.ne.s32.totalorder %s2521_s23, 0 }
 0x2f6   : > { %s1157_s7 = scalar_lea.sflag [#allocation4], %s1156_s6 }
 0x2f7   : > { %p1574_p3 = pnand %p1585_p0, %p2522_p12 }
 0x2f9   : > { %1925 = dma.done.wait (!%p1574_p3), %s1157_s7, 512  }
 0x2fa   : > { %1927 = vsyncadd (!%p1574_p3), %s1157_s7, 4294966784  ;;  %s1166_s13 = scalar_lea.sflag [#allocation15], %s1156_s6 }
 0x2fb   : > { %1929 = dma.done.wait (!%p1574_p3), %s1166_s13, 512  }
 0x2fc   : > { %1931 = vsyncadd (!%p1574_p3), %s1166_s13, 4294966784  ;;  %s2523_s27 = sld [smem:[#allocation24_spill]]  ;;  %s2524_s21 = sld [smem:[#allocation25_spill]] }
 0x2fd   : > { %s2525_s24 = smov %s1938_s25  ;;  %s2526_s25 = smov %s1942_s26 }
 0x302   : > { %p31_p1 = scmp.ge.s32.totalorder %s2523_s27, 10   ;;  %s2527_s26 = smov %s2524_s21 }
 0x304   :  { %33 = sbr.rel (!%p31_p1) target bundleno = 18 (0x12), region = 155 }
 0x30b   :  { %1171 = vsyncpa [#allocation3], 1 }
 0x30c   :  { %1173 = vsyncpa [#allocation3 + $0x1], 1 }
 0x30d   :  { %1174 = vsyncpa [#allocation6], 1 }
 0x30e   :  { %1176 = vsyncpa [#allocation6 + $0x1], 1 }
 0x30f   :  { %1177 = vsyncpa [#allocation9], 1 }
 0x310   :  { %1179 = vsyncpa [#allocation9 + $0x1], 1 }
 0x311   :  { %1180 = vsyncpa [#allocation12], 1 }
 0x312   :  { %1181 = vsyncpa [#allocation4], 1 }
 0x313   :  { %1183 = vsyncpa [#allocation4 + $0x1], 1 }
 0x314   :  { %1184 = vsyncpa [#allocation15], 1 }
 0x315   :  { %1186 = vsyncpa [#allocation15 + $0x1], 1 }

</bundles_post_ra>
